<compile_context>
chip_gen: v6e
topology: v6e:2x2x1
jax: 0.10.0
libtpu: 0.0.40
codegen_flags: <defaults>
</compile_context>

<pallas_src>
import numpy as np
import jax
import jax.numpy as jnp
from jax.experimental import pallas as pl
from jax.experimental.pallas import tpu as pltpu

LN_EPS = 1e-5


def _layer_norm(v, w, b):
    mu = jnp.mean(v, axis=-1, keepdims=True)
    var = jnp.mean((v - mu) ** 2, axis=-1, keepdims=True)
    return (v - mu) * jax.lax.rsqrt(var + LN_EPS) * w + b


# --------------------------------------------------------------- kernel A ---
def ln_inproj_kernel(x_ref, wih_ref, bias_ref, ln1w_ref, ln1b_ref, gi_ref):
    """LN1(x) + input projection for one (time_chunk, batch_tile) block.

    x arrives in bf16 (halved HBM read), LN math runs in f32, the matmul uses
    bf16 operands with f32 accumulation, and gi is stored back in bf16 (halved
    HBM write + halved read in kernel B).
    """
    tc, bb, hs = x_ref.shape
    xn = _layer_norm(x_ref[...].astype(jnp.float32), ln1w_ref[...], ln1b_ref[...])
    xn = xn.reshape(tc * bb, hs).astype(jnp.bfloat16)
    gi = jnp.dot(xn, wih_ref[...], preferred_element_type=jnp.float32)   # (tc*bb,3H)
    gi = gi.reshape(tc, bb, 3 * hs) + bias_ref[...]                       # f32 bias add
    gi_ref[...] = gi.astype(gi_ref.dtype)


# --------------------------------------------------------------- kernel B ---
def gru_kernel(gi_ref, whh_ref, bhn_ref, ln2w_ref, ln2b_ref, out_ref, h_ref):
    """Serial GRU recurrence over one (time_chunk, batch_tile) tile.

    h is carried across time chunks in a persistent VMEM scratch; the post
    LayerNorm is applied once per chunk (vectorized), not once per step.
    The batch tile is large (default: whole padded batch) so the per-step
    h @ W_hh matmul has a fat M dimension instead of 8 rows.
    """
    c = pl.program_id(1)                       # time-chunk axis (innermost)
    tc, bb, h3 = gi_ref.shape
    hs = h3 // 3

    @pl.when(c == 0)
    def _():
        h_ref[...] = jnp.zeros_like(h_ref)

    whh = whh_ref[...]                         # (H, 3H) bf16, hoisted
    bhn = bhn_ref[...]                         # (1, H)  f32, hoisted

    def step(i, hprev):
        gi = gi_ref[i].astype(jnp.float32)                                # (bb,3H)
        gh = jnp.dot(hprev.astype(jnp.bfloat16), whh,
                     preferred_element_type=jnp.float32)                  # (bb,3H)
        r = jax.nn.sigmoid(gi[:, 0:hs] + gh[:, 0:hs])
        z = jax.nn.sigmoid(gi[:, hs:2 * hs] + gh[:, hs:2 * hs])
        n = jnp.tanh(gi[:, 2 * hs:3 * hs] + r * (gh[:, 2 * hs:3 * hs] + bhn))
        hnew = (1.0 - z) * n + z * hprev
        out_ref[i] = hnew                      # raw GRU output (LN applied below)
        return hnew

    h_ref[...] = jax.lax.fori_loop(0, tc, step, h_ref[...], unroll=True)

    # Post-LN hoisted off the per-step serial path; vectorized over the chunk.
    out_ref[...] = _layer_norm(out_ref[...], ln2w_ref[...], ln2b_ref[...])


# ---------------------------------------------------------------- wrapper ---
def _packed_gather_indices(lengths):
    """(batch, time) indices replicating pack_padded_sequence(.., lengths-1).data
    ordering (time-major; batch already sorted by descending length)."""
    steps = np.asarray(lengths) - 1
    bs, ts = [], []
    for t in range(int(steps.max())):
        for b in range(len(steps)):
            if steps[b] > t:
                bs.append(b)
                ts.append(t)
    return np.asarray(bs, np.int32), np.asarray(ts, np.int32)


def _round_up(x, m):
    return ((x + m - 1) // m) * m


def _nbytes(shape, dtype):
    return int(np.prod(shape)) * np.dtype(dtype).itemsize


def _device_vmem_bytes():
    # Generation-aware VMEM capacity (v5e/v6e: 128 MiB, v7x: 64 MiB per core).
    try:
        return int(pltpu.get_tpu_info().vmem_capacity_bytes)
    except Exception:
        return 64 << 20  # conservative fallback valid on every generation


def _vmem_limit(block_bytes, scratch_bytes=0):
    # 2x each block (double buffering) + scratch + headroom, clamped to the
    # device capacity minus room for Mosaic internal scratch / semaphores.
    need = sum(2 * int(b) for b in block_bytes) + int(scratch_bytes) + (4 << 20)
    cap = max(_device_vmem_bytes() - (8 << 20), 32 << 20)
    return int(min(max(need, 32 << 20), cap))


def creativity_decoder(img_feats, latent_codes, questions, lengths, params,
                       *, time_chunk=None, batch_block=None):
    lengths = np.asarray(lengths, np.int32)
    assert (lengths >= 2).all(), "lengths must be >= 2 (see module precondition)"
    assert (lengths[:-1] >= lengths[1:]).all(), "lengths must be sorted descending"

    B, Tq = questions.shape
    H = img_feats.shape[-1]
    S = Tq + 2
    assert H % 128 == 0, "hidden size must be lane aligned (multiple of 128)"

    # ---- tile-size selection.
    if time_chunk is None:
        # <=16 steps per chunk (bounded unroll) and nT minimal so short
        # sequences run in a single grid step (amortizes per-step overhead).
        nT = pl.cdiv(S, 16)
        time_chunk = pl.cdiv(S, nT)
    nT = pl.cdiv(S, time_chunk)
    S_pad = nT * time_chunk

    if batch_block is None:
        # Whole (padded) batch per tile -> fat MXU M dimension in the serial
        # recurrence; capped so blocks / live gate temporaries stay bounded.
        # On v7x (2 TensorCores) pass batch_block = B_pad // 2 explicitly so
        # the "parallel" batch axis feeds both cores.
        batch_block = min(_round_up(B, 16), 256)
    nB = pl.cdiv(B, batch_block)
    B_pad = nB * batch_block

    # ---- glue in plain JAX: embedding gather + concat, time-major, bf16.
    emb = jnp.take(params["embedding"], questions, axis=0)                 # (B,Tq,H)
    x = jnp.concatenate(
        [img_feats[:, None, :], latent_codes[:, None, :], emb], axis=1)    # (B,S,H)
    x = jnp.transpose(x, (1, 0, 2)).astype(jnp.bfloat16)                   # (S,B,H)
    x = jnp.pad(x, ((0, S_pad - S), (0, B_pad - B), (0, 0)))

    # ---- weights: pre-transposed, bf16 for the MXU; biases folded
    #      (b_ih + b_hr/b_hz folded into the precomputed gi; b_hn stays with gh
    #       because of n = tanh(.. + r * (W_hn h + b_hn))).
    wih_t = params["w_ih"].T.astype(jnp.bfloat16)                          # (H,3H)
    whh_t = params["w_hh"].T.astype(jnp.bfloat16)                          # (H,3H)
    b_ih = params["b_ih"].astype(jnp.float32)
    b_hh = params["b_hh"].astype(jnp.float32)
    bias_in = b_ih.at[:2 * H].add(b_hh[:2 * H])[None, :]                   # (1,3H)
    b_hn = b_hh[2 * H:][None, :]                                           # (1,H)
    ln1w = params["ln_emb_w"].astype(jnp.float32)[None, :]
    ln1b = params["ln_emb_b"].astype(jnp.float32)[None, :]
    ln2w = params["ln_out_w"].astype(jnp.float32)[None, :]
    ln2b = params["ln_out_b"].astype(jnp.float32)[None, :]

    # ---- kernel A: gi = LN1(x) @ W_ih + bias, 2-D parallel grid (time,batch).
    # (Weight blocks have a constant index_map; Mosaic only fetches them once.)
    a_blocks = [
        _nbytes((time_chunk, batch_block, H), jnp.bfloat16),
        _nbytes((H, 3 * H), jnp.bfloat16),
        _nbytes((1, 3 * H), jnp.float32),
        2 * _nbytes((1, H), jnp.float32),
        _nbytes((time_chunk, batch_block, 3 * H), jnp.bfloat16),
    ]
    gi = pl.pallas_call(
        ln_inproj_kernel,
        out_shape=jax.ShapeDtypeStruct((S_pad, B_pad, 3 * H), jnp.bfloat16),
        grid=(nT, nB),
        in_specs=[
            pl.BlockSpec((time_chunk, batch_block, H), lambda c, b: (c, b, 0)),
            pl.BlockSpec((H, 3 * H), lambda c, b: (0, 0)),
            pl.BlockSpec((1, 3 * H), lambda c, b: (0, 0)),
            pl.BlockSpec((1, H), lambda c, b: (0, 0)),
            pl.BlockSpec((1, H), lambda c, b: (0, 0)),
        ],
        out_specs=pl.BlockSpec((time_chunk, batch_block, 3 * H),
                               lambda c, b: (c, b, 0)),
        compiler_params=pltpu.CompilerParams(
            dimension_semantics=("parallel", "parallel"),
            vmem_limit_bytes=_vmem_limit(a_blocks)),
    )(x, wih_t, bias_in, ln1w, ln1b)

    # ---- kernel B: serial recurrence; batch tiles parallel, time arbitrary.
    b_blocks = [
        _nbytes((time_chunk, batch_block, 3 * H), jnp.bfloat16),
        _nbytes((H, 3 * H), jnp.bfloat16),
        3 * _nbytes((1, H), jnp.float32),
        _nbytes((time_chunk, batch_block, H), jnp.float32),
    ]
    y = pl.pallas_call(
        gru_kernel,
        out_shape=jax.ShapeDtypeStruct((S_pad, B_pad, H), jnp.float32),
        grid=(nB, nT),
        in_specs=[
            pl.BlockSpec((time_chunk, batch_block, 3 * H), lambda b, c: (c, b, 0)),
            pl.BlockSpec((H, 3 * H), lambda b, c: (0, 0)),
            pl.BlockSpec((1, H), lambda b, c: (0, 0)),
            pl.BlockSpec((1, H), lambda b, c: (0, 0)),
            pl.BlockSpec((1, H), lambda b, c: (0, 0)),
        ],
        out_specs=pl.BlockSpec((time_chunk, batch_block, H),
                               lambda b, c: (c, b, 0)),
        scratch_shapes=[pltpu.VMEM((batch_block, H), jnp.float32)],
        compiler_params=pltpu.CompilerParams(
            dimension_semantics=("parallel", "arbitrary"),
            vmem_limit_bytes=_vmem_limit(
                b_blocks, scratch_bytes=_nbytes((batch_block, H), jnp.float32))),
    )(gi, whh_t, b_hn, ln2w, ln2b)

    # ---- final re-pack, replicating pack_padded_sequence(.., lengths-1).data.
    # TODO(synk): dynamic-total-length packing has no static-shape Pallas
    # equivalent; done host-side with the (static) lengths.
    bidx, tidx = _packed_gather_indices(lengths)
    return y[tidx + 2, bidx, :]                                            # (sum(l-1), H)


# -------------------------------------------------------------- reference ---
def reference(img_feats, latent_codes, questions, lengths, params):
    """Pure-JAX float32 replica of the PyTorch forward."""
    def ln(v, w, b, eps=LN_EPS):
        mu = v.mean(-1, keepdims=True)
        var = ((v - mu) ** 2).mean(-1, keepdims=True)
        return (v - mu) / jnp.sqrt(var + eps) * w + b

    emb = jnp.take(params["embedding"], questions, axis=0)
    x = jnp.concatenate(
        [img_feats[:, None, :], latent_codes[:, None, :], emb], axis=1)
    x = ln(x, params["ln_emb_w"], params["ln_emb_b"])
    B, S, H = x.shape
    h = jnp.zeros((B, H), jnp.float32)
    outs = []
    for t in range(S):
        xt = x[:, t, :]
        gi = xt @ params["w_ih"].T + params["b_ih"]
        gh = h @ params["w_hh"].T + params["b_hh"]
        r = jax.nn.sigmoid(gi[:, :H] + gh[:, :H])
        z = jax.nn.sigmoid(gi[:, H:2 * H] + gh[:, H:2 * H])
        n = jnp.tanh(gi[:, 2 * H:] + r * gh[:, 2 * H:])
        h = (1.0 - z) * n + z * h
        outs.append(h)
    y = ln(jnp.stack(outs, axis=0), params["ln_out_w"], params["ln_out_b"])
    bidx, tidx = _packed_gather_indices(np.asarray(lengths))
    return y[tidx + 2, bidx, :]


def init_params(key, hidden, vocab):
    ks = jax.random.split(key, 5)
    emb = jax.random.normal(ks[0], (vocab, hidden), jnp.float32) * 0.1
    emb = emb.at[0].set(0.0)                   # padding_idx=0
    return {
        "embedding": emb,
        "w_ih": jax.random.normal(ks[1], (3 * hidden, hidden), jnp.float32) * 0.1,
        "w_hh": jax.random.normal(ks[2], (3 * hidden, hidden), jnp.float32) * 0.1,
        "b_ih": jax.random.normal(ks[3], (3 * hidden,), jnp.float32) * 0.1,
        "b_hh": jax.random.normal(ks[4], (3 * hidden,), jnp.float32) * 0.1,
        "ln_emb_w": jnp.ones((hidden,), jnp.float32),
        "ln_emb_b": jnp.zeros((hidden,), jnp.float32),
        "ln_out_w": jnp.ones((hidden,), jnp.float32),
        "ln_out_b": jnp.zeros((hidden,), jnp.float32),
    }


if __name__ == "__main__":
    # H lane-aligned (multiple of 128), B a multiple of the 8-row sublane tile.
    B, Tq, H, V = 16, 8, 128, 50

    key = jax.random.PRNGKey(0)
    kp, k1, k2, k3 = jax.random.split(key, 4)
    params = init_params(kp, H, V)
    img_feats = jax.random.normal(k1, (B, H), jnp.float32)
    latent_codes = jax.random.normal(k2, (B, H), jnp.float32)
    lengths = np.array([8, 8, 7, 7, 6, 6, 5, 5, 4, 4, 3, 3, 2, 2, 2, 2],
                       dtype=np.int32)         # sorted descending, all >= 2
    questions = jax.random.randint(k3, (B, Tq), 1, V, dtype=jnp.int32)
    questions = jnp.where(
        jnp.arange(Tq)[None, :] < jnp.asarray(lengths)[:, None], questions, 0)

    out = creativity_decoder(img_feats, latent_codes, questions, lengths, params)
    out = jax.block_until_ready(out)

    ref = reference(img_feats, latent_codes, questions, lengths, params)
    n_packed = int((lengths - 1).sum())
    assert out.shape == (n_packed, H), out.shape
    # bf16 x / gi / weights stream through the kernels vs a pure-f32 reference:
    # check a robust relative-L2 error plus a loose elementwise bound.
    rel_err = float(jnp.linalg.norm(out - ref) / jnp.linalg.norm(ref))
    max_abs = float(jnp.max(jnp.abs(out - ref)))
    assert rel_err < 6e-2, f"relative L2 error {rel_err}"
    assert max_abs < 2.5e-1, f"max abs diff {max_abs}"
    print("KERNEL_OK")
</pallas_src>

<mosaic_0001>
module attributes {stable_mosaic.version = 11 : i64} {
  func.func @ln_inproj_kernel(%arg0: i32, %arg1: i32, %arg2: memref<10x16x128xbf16, #tpu.memory_space<vmem>>, %arg3: memref<128x384xbf16, #tpu.memory_space<vmem>>, %arg4: memref<1x384xf32, #tpu.memory_space<vmem>>, %arg5: memref<1x128xf32, #tpu.memory_space<vmem>>, %arg6: memref<1x128xf32, #tpu.memory_space<vmem>>, %arg7: memref<10x16x384xbf16, #tpu.memory_space<vmem>>) attributes {dimension_semantics = [#tpu.dimension_semantics<parallel>, #tpu.dimension_semantics<parallel>], iteration_bounds = array<i64: 1, 1>, scalar_prefetch = 0 : i64, scratch_operands = 0 : i64, tpu.core_type = #tpu.core_type<tc>, window_params = [{transform_indices = @transform_0, window_bounds = array<i64: 10, 16, 128>}, {pipeline_mode = #tpu.pipeline_mode<synchronous>, transform_indices = @transform_1, window_bounds = array<i64: 128, 384>}, {pipeline_mode = #tpu.pipeline_mode<synchronous>, transform_indices = @transform_2, window_bounds = array<i64: 1, 384>}, {pipeline_mode = #tpu.pipeline_mode<synchronous>, transform_indices = @transform_3, window_bounds = array<i64: 1, 128>}, {pipeline_mode = #tpu.pipeline_mode<synchronous>, transform_indices = @transform_4, window_bounds = array<i64: 1, 128>}, {transform_indices = @transform_5, window_bounds = array<i64: 10, 16, 384>}]} {
    %c0 = arith.constant 0 : index
    %c0_0 = arith.constant 0 : index
    %c0_1 = arith.constant 0 : index
    %0 = vector.load %arg2[%c0, %c0_0, %c0_1] : memref<10x16x128xbf16, #tpu.memory_space<vmem>>, vector<10x16x128xbf16>
    %1 = arith.extf %0 : vector<10x16x128xbf16> to vector<10x16x128xf32>
    %c0_2 = arith.constant 0 : index
    %c0_3 = arith.constant 0 : index
    %2 = vector.load %arg5[%c0_2, %c0_3] : memref<1x128xf32, #tpu.memory_space<vmem>>, vector<1x128xf32>
    %c0_4 = arith.constant 0 : index
    %c0_5 = arith.constant 0 : index
    %3 = vector.load %arg6[%c0_4, %c0_5] : memref<1x128xf32, #tpu.memory_space<vmem>>, vector<1x128xf32>
    %cst = arith.constant dense<0.000000e+00> : vector<10x16xf32>
    %4 = vector.multi_reduction <add>, %1, %cst [2] : vector<10x16x128xf32> to vector<10x16xf32>
    %5 = vector.shape_cast %4 : vector<10x16xf32> to vector<10x16x1xf32>
    %cst_6 = arith.constant 1.280000e+02 : f32
    %6 = vector.broadcast %cst_6 : f32 to vector<10x16x1xf32>
    %7 = arith.divf %5, %6 : vector<10x16x1xf32>
    %8 = vector.broadcast %7 : vector<10x16x1xf32> to vector<10x16x128xf32>
    %9 = arith.subf %1, %8 : vector<10x16x128xf32>
    %10 = arith.mulf %9, %9 : vector<10x16x128xf32>
    %cst_7 = arith.constant dense<0.000000e+00> : vector<10x16xf32>
    %11 = vector.multi_reduction <add>, %10, %cst_7 [2] : vector<10x16x128xf32> to vector<10x16xf32>
    %12 = vector.shape_cast %11 : vector<10x16xf32> to vector<10x16x1xf32>
    %cst_8 = arith.constant 1.280000e+02 : f32
    %13 = vector.broadcast %cst_8 : f32 to vector<10x16x1xf32>
    %14 = arith.divf %12, %13 : vector<10x16x1xf32>
    %15 = vector.broadcast %7 : vector<10x16x1xf32> to vector<10x16x128xf32>
    %16 = arith.subf %1, %15 : vector<10x16x128xf32>
    %cst_9 = arith.constant 9.99999974E-6 : f32
    %17 = vector.broadcast %cst_9 : f32 to vector<10x16x1xf32>
    %18 = arith.addf %14, %17 : vector<10x16x1xf32>
    %19 = math.rsqrt %18 : vector<10x16x1xf32>
    %20 = vector.broadcast %19 : vector<10x16x1xf32> to vector<10x16x128xf32>
    %21 = arith.mulf %16, %20 : vector<10x16x128xf32>
    %22 = vector.shape_cast %2 : vector<1x128xf32> to vector<1x1x128xf32>
    %23 = vector.broadcast %22 : vector<1x1x128xf32> to vector<10x16x128xf32>
    %24 = arith.mulf %21, %23 : vector<10x16x128xf32>
    %25 = vector.shape_cast %3 : vector<1x128xf32> to vector<1x1x128xf32>
    %26 = vector.broadcast %25 : vector<1x1x128xf32> to vector<10x16x128xf32>
    %27 = arith.addf %24, %26 : vector<10x16x128xf32>
    %28 = vector.shape_cast %27 : vector<10x16x128xf32> to vector<160x128xf32>
    %29 = arith.truncf %28 : vector<160x128xf32> to vector<160x128xbf16>
    %c0_10 = arith.constant 0 : index
    %c0_11 = arith.constant 0 : index
    %30 = vector.load %arg3[%c0_10, %c0_11] : memref<128x384xbf16, #tpu.memory_space<vmem>>, vector<128x384xbf16>
    %cst_12 = arith.constant dense<0.000000e+00> : vector<160x384xf32>
    %31 = tpu.matmul %29, %30, %cst_12 {dimension_numbers = #tpu.dot_dimension_numbers<[1], [0], [0], [1], [0, 0, 1, 1], [], []>} : vector<160x128xbf16>, vector<128x384xbf16>, vector<160x384xf32> -> vector<160x384xf32>
    %32 = vector.shape_cast %31 : vector<160x384xf32> to vector<10x16x384xf32>
    %c0_13 = arith.constant 0 : index
    %c0_14 = arith.constant 0 : index
    %33 = vector.load %arg4[%c0_13, %c0_14] : memref<1x384xf32, #tpu.memory_space<vmem>>, vector<1x384xf32>
    %34 = vector.shape_cast %33 : vector<1x384xf32> to vector<1x1x384xf32>
    %35 = vector.broadcast %34 : vector<1x1x384xf32> to vector<10x16x384xf32>
    %36 = arith.addf %32, %35 : vector<10x16x384xf32>
    %37 = arith.truncf %36 : vector<10x16x384xf32> to vector<10x16x384xbf16>
    %c0_15 = arith.constant 0 : index
    %c0_16 = arith.constant 0 : index
    %c0_17 = arith.constant 0 : index
    %38 = vector.load %arg7[%c0_15, %c0_16, %c0_17] : memref<10x16x384xbf16, #tpu.memory_space<vmem>>, vector<10x16x384xbf16>
    tpu.vector_store %arg7[%c0_15, %c0_16, %c0_17], %37 {strides = array<i32>} : memref<10x16x384xbf16, #tpu.memory_space<vmem>>, vector<10x16x384xbf16>,
    return
  }
  func.func @transform_0(%arg0: i32, %arg1: i32) -> (i32, i32, i32) {
    %c0_i32 = arith.constant 0 : i32
    %c0_i32_0 = arith.constant 0 : i32
    return %arg0, %arg1, %c0_i32 : i32, i32, i32
  }
  func.func @transform_1(%arg0: i32, %arg1: i32) -> (i32, i32) {
    %c0_i32 = arith.constant 0 : i32
    %c0_i32_0 = arith.constant 0 : i32
    %c0_i32_1 = arith.constant 0 : i32
    return %c0_i32, %c0_i32_0 : i32, i32
  }
  func.func @transform_2(%arg0: i32, %arg1: i32) -> (i32, i32) {
    %c0_i32 = arith.constant 0 : i32
    %c0_i32_0 = arith.constant 0 : i32
    %c0_i32_1 = arith.constant 0 : i32
    return %c0_i32, %c0_i32_0 : i32, i32
  }
  func.func @transform_3(%arg0: i32, %arg1: i32) -> (i32, i32) {
    %c0_i32 = arith.constant 0 : i32
    %c0_i32_0 = arith.constant 0 : i32
    %c0_i32_1 = arith.constant 0 : i32
    return %c0_i32, %c0_i32_0 : i32, i32
  }
  func.func @transform_4(%arg0: i32, %arg1: i32) -> (i32, i32) {
    %c0_i32 = arith.constant 0 : i32
    %c0_i32_0 = arith.constant 0 : i32
    %c0_i32_1 = arith.constant 0 : i32
    return %c0_i32, %c0_i32_0 : i32, i32
  }
  func.func @transform_5(%arg0: i32, %arg1: i32) -> (i32, i32, i32) {
    %c0_i32 = arith.constant 0 : i32
    %c0_i32_0 = arith.constant 0 : i32
    return %arg0, %arg1, %c0_i32 : i32, i32, i32
  }
}

</mosaic_0001>

<bundles_post_ra>
// kernel: tpu_custom_call.1
= control target key start
LH: loop header
LB: loop body
LE: loop exit
PB: predicated region body
PF: predicated region fallthrough
CT: control target
= control target key end

     0   :  { %10 = vsyncpa [#allocation3], 0  ;;  %s1853_s0 = inlined_call_operand.hbm [shape: bf16[10,16,128], index: 0, kind: input, shape index: {}]   ;;  %s1854_s1 = inlined_call_operand.hbm [shape: bf16[128,384], index: 1, kind: input, shape index: {}]   ;;  %s1855_s2 = inlined_call_operand.vmem [shape: f32[1,384], index: 2, kind: input, shape index: {}]   ;;  %s1856_s3 = inlined_call_operand.vmem [shape: f32[1,128], index: 3, kind: input, shape index: {}]   ;;  %s1857_s4 = inlined_call_operand.vmem [shape: f32[1,128], index: 4, kind: input, shape index: {}]   ;;  %s1858_s5 = inlined_call_operand.hbm [shape: bf16[10,16,384], index: 5, kind: output, shape index: {}]  }
   0x1   :  { %11 = vsyncpa [#allocation6], 0 }
   0x2   :  { %12 = vsyncpa [#allocation4], 0  ;;  %s1471_s18 = smov [#allocation2]  }
   0x3   :  { %s18_s19 = sshll.u32 %s1471_s18, 4  ;;  %s19_s19 = int_to_ptr.vmem [resolvable:$true] %s18_s19 }
   0x4   :  { %s1413_s20 = scalar_lea.vmem %s19_s19, 1280  ;;  %p1418_p1 = scmp.lt.s32.totalorder %s19_s19, %s19_s19 }
   0x5   :  { %p1414_p0 = scmp.ne.s32.totalorder %s19_s19, %s1413_s20  ;;  %p1419_p2 = scmp.lt.s32.totalorder %s1413_s20, %s1413_s20 }
   0x7   :  { %p1420_p3 = por %p1419_p2, %p1418_p1 }
   0x9   :  { %p1421_p4 = pnand %p1420_p3, %p1414_p0 }
   0xb   :  { %1424 = shalt.err (!%p1421_p4)
}
   0xc   :  { %s1472_s21 = smov 64   ;;  %s1473_s22 = smov 4  }
   0xd   :  { %24 = dma.hbm_to_vmem [thread:$0]  %s1853_s0, 1280, %s19_s19, [#allocation3], %s1472_s21, %s1472_s21, %s1473_s22  }
   0xe   :  { %s1474_s25 = smov [#allocation5]  }
   0xf   :  { %s30_s26 = sshll.u32 %s1474_s25, 4  ;;  %s31_s26 = int_to_ptr.vmem [resolvable:$true] %s30_s26 }
  0x10   :  { %s1433_s27 = scalar_lea.vmem %s31_s26, 3072  ;;  %p1438_p6 = scmp.lt.s32.totalorder %s31_s26, %s31_s26 }
  0x11   :  { %p1434_p5 = scmp.ne.s32.totalorder %s31_s26, %s1433_s27  ;;  %p1439_p7 = scmp.lt.s32.totalorder %s1433_s27, %s1433_s27 }
  0x13   :  { %p1440_p8 = por %p1439_p7, %p1438_p6 }
  0x15   :  { %p1441_p9 = pnand %p1440_p8, %p1434_p5 }
  0x17   :  { %1444 = shalt.err (!%p1441_p9)
}
  0x18   :  { %s1475_s28 = smov 192   ;;  %s1476_s29 = smov 12  }
  0x19   :  { %36 = dma.hbm_to_vmem [thread:$0]  %s1854_s1, 3072, %s31_s26, [#allocation6], %s1475_s28, %s1475_s28, %s1476_s29  }
  0x1a   :  { %1465 = dma.done.wait [#allocation3], 1280  }
  0x1b   :  { %1466 = vsyncadd [#allocation3], 4294966016 }
  0x1c   :  { %1467 = dma.done.wait [#allocation6], 3072  }
  0x1d   :  { %1468 = vsyncadd [#allocation6], 4294964224  ;;  %v1518_v0 = vld [vmem:[#allocation2] sm:$0xff]   ;;  %v1520_v1 = vld [vmem:[#allocation2 + $0x8] sm:$0xff]  }
  0x1e   :  { %v1224_v2 = vunpack.c.l.bf16 %v1518_v0  ;;  %v1228_v3 = vunpack.c.l.bf16 %v1520_v1  ;;  %v1225_v4 = vunpack.c.h.bf16 %v1518_v0  ;;  %v1229_v5 = vunpack.c.h.bf16 %v1520_v1  ;;  %v1526_v6 = vld [vmem:[#allocation2 + $0x10] sm:$0xff]   ;;  %v1528_v7 = vld [vmem:[#allocation2 + $0x18] sm:$0xff]   ;;  %v1532_v10 = vld [vmem:[#allocation2 + $0x20] sm:$0xff]  }
  0x1f   :  { %v1232_v8 = vunpack.c.l.bf16 %v1526_v6  ;;  %v1233_v9 = vunpack.c.h.bf16 %v1526_v6  ;;  %v1236_v11 = vunpack.c.l.bf16 %v1528_v7  ;;  %v1237_v12 = vunpack.c.h.bf16 %v1528_v7  ;;  %v1544_v15 = vld [vmem:[#allocation2 + $0x28] sm:$0xff]   ;;  %v1552_v18 = vld [vmem:[#allocation2 + $0x30] sm:$0xff]   ;;  %v1560_v21 = vld [vmem:[#allocation2 + $0x38] sm:$0xff]  }
  0x20   :  { %92 = vadd.xlane.f32.xlu0 %v1224_v2  ;;  %96 = vadd.xlane.f32.xlu1 %v1228_v3  ;;  %v1240_v13 = vunpack.c.l.bf16 %v1532_v10  ;;  %v1241_v14 = vunpack.c.h.bf16 %v1532_v10  ;;  %v1244_v16 = vunpack.c.l.bf16 %v1544_v15  ;;  %v1245_v17 = vunpack.c.h.bf16 %v1544_v15  ;;  %v1568_v24 = vld [vmem:[#allocation2 + $0x40] sm:$0xff]   ;;  %v1576_v27 = vld [vmem:[#allocation2 + $0x48] sm:$0xff]  }
  0x21   :  { %v1248_v19 = vunpack.c.l.bf16 %v1552_v18  ;;  %v1249_v20 = vunpack.c.h.bf16 %v1552_v18  ;;  %v1252_v22 = vunpack.c.l.bf16 %v1560_v21  ;;  %v1253_v23 = vunpack.c.h.bf16 %v1560_v21  ;;  %v1333_v30 = vld [vmem:[#allocation5 + $0xac] ss:$12 sps:$4 sm:$0xff]   ;;  %v1335_v31 = vld [vmem:[#allocation5 + $0xa8] ss:$12 sps:$4 sm:$0xff]  }
  0x22   :  { %v1256_v25 = vunpack.c.l.bf16 %v1568_v24  ;;  %v1257_v26 = vunpack.c.h.bf16 %v1568_v24  ;;  %v1260_v28 = vunpack.c.l.bf16 %v1576_v27  ;;  %v1261_v29 = vunpack.c.h.bf16 %v1576_v27  ;;  %535 = vmatprep.subr.bf16.mxu0 %v1333_v30 }
  0x23   :  { %536 = vmatpush1.bf16.msra.mxu0 %v1335_v31 }
  0x24   :  { %94 = vadd.xlane.f32.xlu0 %v1225_v4  ;;  %98 = vadd.xlane.f32.xlu1 %v1229_v5 }
  0x28   :  { %100 = vadd.xlane.f32.xlu0 %v1232_v8  ;;  %102 = vadd.xlane.f32.xlu1 %v1233_v9 }
  0x2c   :  { %104 = vadd.xlane.f32.xlu0 %v1236_v11  ;;  %106 = vadd.xlane.f32.xlu1 %v1237_v12 }
  0x30   :  { %108 = vadd.xlane.f32.xlu0 %v1240_v13  ;;  %110 = vadd.xlane.f32.xlu1 %v1241_v14 }
  0x34   :  { %112 = vadd.xlane.f32.xlu0 %v1244_v16  ;;  %114 = vadd.xlane.f32.xlu1 %v1245_v17 }
  0x38   :  { %116 = vadd.xlane.f32.xlu0 %v1248_v19  ;;  %118 = vadd.xlane.f32.xlu1 %v1249_v20 }
  0x3c   :  { %120 = vadd.xlane.f32.xlu0 %v1252_v22  ;;  %122 = vadd.xlane.f32.xlu1 %v1253_v23 }
  0x40   :  { %124 = vadd.xlane.f32.xlu0 %v1256_v25  ;;  %126 = vadd.xlane.f32.xlu1 %v1257_v26 }
  0x44   :  { %128 = vadd.xlane.f32.xlu0 %v1260_v28  ;;  %130 = vadd.xlane.f32.xlu1 %v1261_v29 }
  0xa9   :  { %v93_v32 = vpop.xlane.xlu0 %92  ;;  %v97_v33 = vpop.xlane.xlu1 %96 }
  0xaa   :  { %v133_v34 = vmul.f32 0.0078125, %v93_v32  ;;  %v135_v35 = vmul.f32 0.0078125, %v97_v33  ;;  %v1342_v32 = vld [vmem:[#allocation5 + $0x98] ss:$12 sps:$4 sm:$0xff]  }
  0xac   :  { %v1588_v36 = vsub.f32 %v1224_v2, %v133_v34  ;;  %v1590_v37 = vsub.f32 %v1228_v3, %v135_v35  ;;  %v1336_v3 = vld [vmem:[#allocation5 + $0x94] ss:$12 sps:$4 sm:$0xff]   ;;  %v1343_v34 = vld [vmem:[#allocation5 + $0x78] ss:$12 sps:$4 sm:$0xff]  }
  0xad   :  { %v95_v38 = vpop.xlane.xlu0 %94  ;;  %v99_v39 = vpop.xlane.xlu1 %98  ;;  %537 = vmatprep.subr.bf16.mxu0 %v1336_v3 }
  0xae   :  { %v134_v40 = vmul.f32 0.0078125, %v95_v38  ;;  %v173_v41 = vmul.f32 %v1588_v36, %v1588_v36  ;;  %v136_v42 = vmul.f32 0.0078125, %v99_v39  ;;  %v175_v45 = vmul.f32 %v1590_v37, %v1590_v37 }
  0xb0   :  { %v1594_v43 = vsub.f32 %v1225_v4, %v134_v40  ;;  %193 = vadd.xlane.f32.xlu0 %v173_v41  ;;  %v1596_v44 = vsub.f32 %v1229_v5, %v136_v42  ;;  %v1338_v4 = vld [vmem:[#allocation5 + $0xb0] ss:$12 sps:$4 sm:$0xff]   ;;  %v1346_v42 = vld [vmem:[#allocation5 + $0x80] ss:$12 sps:$4 sm:$0xff]  }
  0xb1   :  { %v101_v46 = vpop.xlane.xlu0 %100  ;;  %v103_v47 = vpop.xlane.xlu1 %102  ;;  %v1339_v5 = vld [vmem:[#allocation5 + $0x90] ss:$12 sps:$4 sm:$0xff]   ;;  %1289 = vmatprep.subr.bf16.mxu1 %v1338_v4 }
  0xb2   :  { %v137_v48 = vmul.f32 0.0078125, %v101_v46  ;;  %v174_v49 = vmul.f32 %v1594_v43, %v1594_v43  ;;  %v138_v50 = vmul.f32 0.0078125, %v103_v47  ;;  %v176_v53 = vmul.f32 %v1596_v44, %v1596_v44  ;;  %538 = vmatpush1.bf16.msra.mxu0 %v1339_v5  ;;  %1290 = vmatpush3.bf16.msra.mxu1 %v1338_v4  ;;  %v1344_v41 = vld [vmem:[#allocation5 + $0x64] ss:$12 sps:$4 sm:$0xff]   ;;  %v1347_v46 = vld [vmem:[#allocation5 + $0x60] ss:$12 sps:$4 sm:$0xff]  }
  0xb3   :  { %1291 = vmatprep.subr.bf16.mxu1 %v1342_v32 }
  0xb4   :  { %v1602_v51 = vsub.f32 %v1232_v8, %v137_v48  ;;  %197 = vadd.xlane.f32.xlu0 %v175_v45  ;;  %195 = vadd.xlane.f32.xlu1 %v174_v49  ;;  %v1606_v52 = vsub.f32 %v1233_v9, %v138_v50 }
  0xb5   :  { %v105_v54 = vpop.xlane.xlu0 %104  ;;  %v107_v55 = vpop.xlane.xlu1 %106 }
  0xb6   :  { %v139_v56 = vmul.f32 0.0078125, %v105_v54  ;;  %v177_v57 = vmul.f32 %v1602_v51, %v1602_v51  ;;  %v140_v58 = vmul.f32 0.0078125, %v107_v55  ;;  %v178_v61 = vmul.f32 %v1606_v52, %v1606_v52  ;;  %1292 = vmatpush3.bf16.msra.mxu1 %v1342_v32  ;;  %v1350_v54 = vld [vmem:[#allocation5 + $0x68] ss:$12 sps:$4 sm:$0xff]  }
  0xb7   :  { %1293 = vmatprep.subr.bf16.mxu1 %v1346_v42  ;;  %v1364_v32 = vld [vmem:[#allocation5 + $0x8] ss:$12 sps:$4 sm:$0xff]  }
  0xb8   :  { %v1614_v59 = vsub.f32 %v1236_v11, %v139_v56  ;;  %199 = vadd.xlane.f32.xlu1 %v176_v53  ;;  %201 = vadd.xlane.f32.xlu0 %v177_v57  ;;  %v1618_v60 = vsub.f32 %v1237_v12, %v140_v58  ;;  %v1348_v53 = vld [vmem:[#allocation5 + $0x4c] ss:$12 sps:$4 sm:$0xff]   ;;  %v1351_v56 = vld [vmem:[#allocation5 + $0x48] ss:$12 sps:$4 sm:$0xff]  }
  0xb9   :  { %v109_v62 = vpop.xlane.xlu0 %108  ;;  %v111_v63 = vpop.xlane.xlu1 %110 }
  0xba   :  { %v141_v0 = vmul.f32 0.0078125, %v109_v62  ;;  %v179_v1 = vmul.f32 %v1614_v59, %v1614_v59  ;;  %v142_v2 = vmul.f32 0.0078125, %v111_v63  ;;  %v180_v8 = vmul.f32 %v1618_v60, %v1618_v60  ;;  %1294 = vmatpush3.bf16.msra.mxu1 %v1346_v42  ;;  %v1352_v63 = vld [vmem:[#allocation5 + $0x34] ss:$12 sps:$4 sm:$0xff]  }
  0xbb   :  { %1295 = vmatprep.subr.bf16.mxu1 %v1350_v54 }
  0xbc   :  { %v1626_v6 = vsub.f32 %v1240_v13, %v141_v0  ;;  %203 = vadd.xlane.f32.xlu1 %v178_v61  ;;  %205 = vadd.xlane.f32.xlu0 %v179_v1  ;;  %v1630_v7 = vsub.f32 %v1241_v14, %v142_v2  ;;  %v1340_v13 = vld [vmem:[#allocation5 + $0x7c] ss:$12 sps:$4 sm:$0xff]  }
  0xbd   :  { %v113_v9 = vpop.xlane.xlu0 %112  ;;  %v115_v11 = vpop.xlane.xlu1 %114  ;;  %539 = vmatprep.subr.bf16.mxu0 %v1340_v13  ;;  %v1354_v0 = vld [vmem:[#allocation5 + $0x50] ss:$12 sps:$4 sm:$0xff]  }
  0xbe   :  { %v143_v12 = vmul.f32 0.0078125, %v113_v9  ;;  %v181_v30 = vmul.f32 %v1626_v6, %v1626_v6  ;;  %v144_v31 = vmul.f32 0.0078125, %v115_v11  ;;  %v182_v33 = vmul.f32 %v1630_v7, %v1630_v7  ;;  %540 = vmatpush1.bf16.msra.mxu0 %v1343_v34  ;;  %1296 = vmatpush3.bf16.msra.mxu1 %v1350_v54  ;;  %v1355_v2 = vld [vmem:[#allocation5 + $0x30] ss:$12 sps:$4 sm:$0xff]   ;;  %v1358_v11 = vld [vmem:[#allocation5 + $0x38] ss:$12 sps:$4 sm:$0xff]  }
  0xbf   :  { %541 = vmatprep.subr.bf16.mxu0 %v1344_v41  ;;  %1297 = vmatprep.subr.bf16.mxu1 %v1354_v0  ;;  %v1356_v9 = vld [vmem:[#allocation5 + $0x1c] ss:$12 sps:$4 sm:$0xff]   ;;  %v1360_v13 = vld [vmem:[#allocation5 + $0x4] ss:$12 sps:$4 sm:$0xff]  }
  0xc0   :  { %v1638_v10 = vsub.f32 %v1244_v16, %v143_v12  ;;  %207 = vadd.xlane.f32.xlu1 %v180_v8  ;;  %209 = vadd.xlane.f32.xlu0 %v181_v30  ;;  %v1642_v14 = vsub.f32 %v1245_v17, %v144_v31  ;;  %v1359_v30 = vld [vmem:[#allocation5 + $0x18] ss:$12 sps:$4 sm:$0xff]  }
  0xc1   :  { %v117_v35 = vpop.xlane.xlu0 %116  ;;  %v119_v38 = vpop.xlane.xlu1 %118 }
  0xc2   :  { %v145_v39 = vmul.f32 0.0078125, %v117_v35  ;;  %v183_v40 = vmul.f32 %v1638_v10, %v1638_v10  ;;  %v146_v16 = vmul.f32 0.0078125, %v119_v38  ;;  %v184_v45 = vmul.f32 %v1642_v14, %v1642_v14  ;;  %542 = vmatpush1.bf16.msra.mxu0 %v1347_v46  ;;  %1298 = vmatpush3.bf16.msra.mxu1 %v1354_v0 }
  0xc3   :  { %543 = vmatprep.subr.bf16.mxu0 %v1348_v53  ;;  %1299 = vmatprep.subr.bf16.mxu1 %v1358_v11 }
  0xc4   :  { %v1650_v15 = vsub.f32 %v1248_v19, %v145_v39  ;;  %211 = vadd.xlane.f32.xlu1 %v182_v33  ;;  %213 = vadd.xlane.f32.xlu0 %v183_v40  ;;  %v1654_v17 = vsub.f32 %v1249_v20, %v146_v16  ;;  %v1477_v33 = vmov 0  }
  0xc5   :  { %v121_v47 = vpop.xlane.xlu0 %120  ;;  %v123_v48 = vpop.xlane.xlu1 %122  ;;  %567 = vmatprep.mubr.bf16.mxu0 %v1477_v33 }
  0xc6   :  { %v147_v49 = vmul.f32 0.0078125, %v121_v47  ;;  %v185_v50 = vmul.f32 %v1650_v15, %v1650_v15  ;;  %v148_v19 = vmul.f32 0.0078125, %v123_v48  ;;  %v186_v55 = vmul.f32 %v1654_v17, %v1654_v17  ;;  %544 = vmatpush1.bf16.msra.mxu0 %v1351_v56  ;;  %1300 = vmatpush3.bf16.msra.mxu1 %v1358_v11 }
  0xc7   :  { %545 = vmatprep.subr.bf16.mxu0 %v1352_v63 }
  0xc8   :  { %v1662_v18 = vsub.f32 %v1252_v22, %v147_v49  ;;  %215 = vadd.xlane.f32.xlu1 %v184_v45  ;;  %217 = vadd.xlane.f32.xlu0 %v185_v50  ;;  %v1666_v20 = vsub.f32 %v1253_v23, %v148_v19 }
  0xc9   :  { %v125_v57 = vpop.xlane.xlu0 %124  ;;  %v127_v58 = vpop.xlane.xlu1 %126 }
  0xca   :  { %v149_v61 = vmul.f32 0.0078125, %v125_v57  ;;  %v187_v62 = vmul.f32 %v1662_v18, %v1662_v18  ;;  %v150_v22 = vmul.f32 0.0078125, %v127_v58  ;;  %v188_v1 = vmul.f32 %v1666_v20, %v1666_v20  ;;  %546 = vmatpush1.bf16.msra.mxu0 %v1355_v2 }
  0xcb   :  { %547 = vmatprep.subr.bf16.mxu0 %v1356_v9 }
  0xcc   :  { %v1674_v21 = vsub.f32 %v1256_v25, %v149_v61  ;;  %219 = vadd.xlane.f32.xlu1 %v186_v55  ;;  %221 = vadd.xlane.f32.xlu0 %v187_v62  ;;  %v1678_v23 = vsub.f32 %v1257_v26, %v150_v22 }
  0xcd   :  { %v129_v3 = vpop.xlane.xlu0 %128  ;;  %v131_v4 = vpop.xlane.xlu1 %130 }
  0xce   :  { %v151_v5 = vmul.f32 0.0078125, %v129_v3  ;;  %v189_v8 = vmul.f32 %v1674_v21, %v1674_v21  ;;  %v152_v25 = vmul.f32 0.0078125, %v131_v4  ;;  %v190_v12 = vmul.f32 %v1678_v23, %v1678_v23  ;;  %548 = vmatpush1.bf16.msra.mxu0 %v1359_v30  ;;  %v1702_v3 = vld [vmem:[%s1856_s3] ss:$0 sm:$0xff] }
  0xcf   :  { %549 = vmatprep.subr.bf16.mxu0 %v1360_v13 }
  0xd0   :  { %v1686_v24 = vsub.f32 %v1260_v28, %v151_v5  ;;  %223 = vadd.xlane.f32.xlu1 %v188_v1  ;;  %225 = vadd.xlane.f32.xlu0 %v189_v8  ;;  %v1690_v26 = vsub.f32 %v1261_v29, %v152_v25  ;;  %v1362_v28 = vld [vmem:[#allocation5 + $0x20] ss:$12 sps:$4 sm:$0xff]  }
  0xd1   :  { %v1363_v29 = vld [vmem:[#allocation5] ss:$12 sps:$4 sm:$0xff]   ;;  %1301 = vmatprep.subr.bf16.mxu1 %v1362_v28 }
  0xd2   :  { %v191_v31 = vmul.f32 %v1686_v24, %v1686_v24  ;;  %v192_v27 = vmul.f32 %v1690_v26, %v1690_v26  ;;  %550 = vmatpush1.bf16.msra.mxu0 %v1363_v29  ;;  %1302 = vmatpush3.bf16.msra.mxu1 %v1362_v28  ;;  %v1709_v28 = vld [vmem:[%s1857_s4] ss:$0 sm:$0xff] }
  0xd3   :  { %1303 = vmatprep.subr.bf16.mxu1 %v1364_v32 }
  0xd4   :  { %227 = vadd.xlane.f32.xlu1 %v190_v12  ;;  %229 = vadd.xlane.f32.xlu0 %v191_v31 }
  0xd6   :  { %1304 = vmatpush3.bf16.msra.mxu1 %v1364_v32 }
  0xd8   :  { %231 = vadd.xlane.f32.xlu1 %v192_v27 }
 0x139   :  { %v194_v34 = vpop.xlane.xlu0 %193 }
 0x13a   :  { %v233_v35 = vmul.f32 0.0078125, %v194_v34 }
 0x13c   :  { %v253_v38 = vadd.f32 1e-05, %v233_v35 }
 0x13d   :  { %v196_v39 = vpop.xlane.xlu1 %195  ;;  %v198_v40 = vpop.xlane.xlu0 %197 }
 0x13e   :  { %1365 = vrsqrt.f32 %v253_v38  ;;  %v234_v16 = vmul.f32 0.0078125, %v196_v39  ;;  %v235_v41 = vmul.f32 0.0078125, %v198_v40 }
 0x140   :  { %v254_v42 = vadd.f32 1e-05, %v234_v16  ;;  %v255_v45 = vadd.f32 1e-05, %v235_v41 }
 0x141   :  { %v200_v46 = vpop.xlane.xlu1 %199  ;;  %v202_v47 = vpop.xlane.xlu0 %201 }
 0x142   :  { %1367 = vrsqrt.f32 %v254_v42  ;;  %v236_v48 = vmul.f32 0.0078125, %v200_v46  ;;  %v237_v49 = vmul.f32 0.0078125, %v202_v47 }
 0x143   :  { %1369 = vrsqrt.f32 %v255_v45 }
 0x144   :  { %v256_v50 = vadd.f32 1e-05, %v236_v48  ;;  %v257_v19 = vadd.f32 1e-05, %v237_v49 }
 0x145   :  { %v204_v53 = vpop.xlane.xlu1 %203  ;;  %v206_v54 = vpop.xlane.xlu0 %205 }
 0x146   :  { %1371 = vrsqrt.f32 %v256_v50  ;;  %v238_v55 = vmul.f32 0.0078125, %v204_v53  ;;  %v239_v56 = vmul.f32 0.0078125, %v206_v54 }
 0x147   :  { %1373 = vrsqrt.f32 %v257_v19 }
 0x148   :  { %v258_v57 = vadd.f32 1e-05, %v238_v55  ;;  %v259_v58 = vadd.f32 1e-05, %v239_v56 }
 0x149   :  { %v208_v61 = vpop.xlane.xlu1 %207  ;;  %v210_v62 = vpop.xlane.xlu0 %209 }
 0x14a   :  { %1375 = vrsqrt.f32 %v258_v57  ;;  %v240_v22 = vmul.f32 0.0078125, %v208_v61  ;;  %v241_v63 = vmul.f32 0.0078125, %v210_v62 }
 0x14b   :  { %v1366_v0 = vpop.eup %1365  ;;  %1377 = vrsqrt.f32 %v259_v58 }
 0x14c   :  { %v260_v1 = vadd.f32 1e-05, %v240_v22  ;;  %v261_v2 = vadd.f32 1e-05, %v241_v63  ;;  %v293_v4 = vmul.f32 %v1366_v0, %v1588_v36 }
 0x14d   :  { %v212_v5 = vpop.xlane.xlu1 %211  ;;  %v214_v8 = vpop.xlane.xlu0 %213 }
 0x14e   :  { %1379 = vrsqrt.f32 %v260_v1  ;;  %v242_v25 = vmul.f32 0.0078125, %v212_v5  ;;  %v243_v9 = vmul.f32 0.0078125, %v214_v8  ;;  %v319_v12 = vmul.f32 %v1702_v3, %v293_v4 }
 0x14f   :  { %v1368_v11 = vpop.eup %1367  ;;  %1381 = vrsqrt.f32 %v261_v2 }
 0x150   :  { %v1370_v30 = vpop.eup %1369  ;;  %v262_v31 = vadd.f32 1e-05, %v242_v25  ;;  %v263_v13 = vadd.f32 1e-05, %v243_v9  ;;  %v294_v27 = vmul.f32 %v1368_v11, %v1594_v43  ;;  %v345_v40 = vadd.f32 %v1709_v28, %v319_v12 }
 0x151   :  { %v216_v36 = vpop.xlane.xlu1 %215  ;;  %v218_v29 = vpop.xlane.xlu0 %217  ;;  %v295_v32 = vmul.f32 %v1370_v30, %v1590_v37 }
 0x152   :  { %1383 = vrsqrt.f32 %v262_v31  ;;  %v244_v34 = vmul.f32 0.0078125, %v216_v36  ;;  %v245_v35 = vmul.f32 0.0078125, %v218_v29  ;;  %v320_v38 = vmul.f32 %v1702_v3, %v294_v27 }
 0x153   :  { %v1372_v39 = vpop.eup %1371  ;;  %1385 = vrsqrt.f32 %v263_v13  ;;  %v321_v37 = vmul.f32 %v1702_v3, %v295_v32 }
 0x154   :  { %v1374_v16 = vpop.eup %1373  ;;  %v264_v41 = vadd.f32 1e-05, %v244_v34  ;;  %v265_v42 = vadd.f32 1e-05, %v245_v35  ;;  %v346_v45 = vadd.f32 %v1709_v28, %v320_v38  ;;  %v296_v43 = vmul.f32 %v1372_v39, %v1596_v44 }
 0x155   :  { %v220_v46 = vpop.xlane.xlu1 %219  ;;  %v222_v47 = vpop.xlane.xlu0 %221  ;;  %v297_v48 = vmul.f32 %v1374_v16, %v1602_v51  ;;  %v347_v51 = vadd.f32 %v1709_v28, %v321_v37 }
 0x156   :  { %1387 = vrsqrt.f32 %v264_v41  ;;  %v246_v49 = vmul.f32 0.0078125, %v220_v46  ;;  %v247_v50 = vmul.f32 0.0078125, %v222_v47  ;;  %v365_v19 = vpack.c.bf16 %v346_v45, %v345_v40 }
 0x157   :  { %v1376_v53 = vpop.eup %1375  ;;  %1389 = vrsqrt.f32 %v265_v42  ;;  %v322_v54 = vmul.f32 %v1702_v3, %v296_v43  ;;  %v323_v55 = vmul.f32 %v1702_v3, %v297_v48 }
 0x158   :  { %v1378_v56 = vpop.eup %1377  ;;  %v266_v57 = vadd.f32 1e-05, %v246_v49  ;;  %v267_v58 = vadd.f32 1e-05, %v247_v50  ;;  %568 = vmatmul.mubr.bf16.vlgmr.msra.gmra.mxu0 %v365_v19  ;;  %1305 = vmatprep.mubr.bf16.mxu1 %v365_v19  ;;  %v298_v44 = vmul.f32 %v1376_v53, %v1606_v52 }
 0x159   :  { %v224_v61 = vpop.xlane.xlu1 %223  ;;  %v226_v62 = vpop.xlane.xlu0 %225  ;;  %v348_v22 = vadd.f32 %v1709_v28, %v322_v54  ;;  %577 = vmatprep.mubr.bf16.mxu0 %v1477_v33  ;;  %v299_v63 = vmul.f32 %v1378_v56, %v1614_v59  ;;  %v349_v52 = vadd.f32 %v1709_v28, %v323_v55 }
 0x15a   :  { %1391 = vrsqrt.f32 %v266_v57  ;;  %v248_v0 = vmul.f32 0.0078125, %v224_v61  ;;  %v249_v1 = vmul.f32 0.0078125, %v226_v62  ;;  %v324_v2 = vmul.f32 %v1702_v3, %v298_v44 }
 0x15b   :  { %v1380_v4 = vpop.eup %1379  ;;  %1393 = vrsqrt.f32 %v267_v58  ;;  %v366_v5 = vpack.c.bf16 %v348_v22, %v347_v51  ;;  %v325_v31 = vmul.f32 %v1702_v3, %v299_v63 }
 0x15c   :  { %v1382_v8 = vpop.eup %1381  ;;  %v268_v25 = vadd.f32 1e-05, %v248_v0  ;;  %v269_v9 = vadd.f32 1e-05, %v249_v1  ;;  %v350_v11 = vadd.f32 %v1709_v28, %v324_v2  ;;  %v300_v12 = vmul.f32 %v1380_v4, %v1618_v60 }
 0x15d   :  { %1306 = vmatmul.mubr.bf16.vlgmr.msra.gmra.mxu1 %v366_v5  ;;  %v228_v30 = vpop.xlane.xlu1 %227  ;;  %v230_v59 = vpop.xlane.xlu0 %229  ;;  %v301_v13 = vmul.f32 %v1382_v8, %v1626_v6  ;;  %v351_v6 = vadd.f32 %v1709_v28, %v325_v31 }
 0x15e   :  { %1395 = vrsqrt.f32 %v268_v25  ;;  %v250_v27 = vmul.f32 0.0078125, %v228_v30  ;;  %v251_v36 = vmul.f32 0.0078125, %v230_v59  ;;  %v367_v29 = vpack.c.bf16 %v350_v11, %v349_v52 }
 0x15f   :  { %v1384_v32 = vpop.eup %1383  ;;  %1397 = vrsqrt.f32 %v269_v9  ;;  %v326_v34 = vmul.f32 %v1702_v3, %v300_v12  ;;  %v327_v40 = vmul.f32 %v1702_v3, %v301_v13 }
 0x160   :  { %v1386_v35 = vpop.eup %1385  ;;  %v270_v38 = vadd.f32 1e-05, %v250_v27  ;;  %v271_v39 = vadd.f32 1e-05, %v251_v36  ;;  %578 = vmatmul.mubr.bf16.gmra.mxu0 %v366_v5  ;;  %1309 = vmatprep.mubr.bf16.mxu1 %v367_v29  ;;  %v302_v60 = vmul.f32 %v1384_v32, %v1630_v7 }
 0x161   :  { %v232_v16 = vpop.xlane.xlu1 %231  ;;  %v352_v41 = vadd.f32 %v1709_v28, %v326_v34  ;;  %587 = vmatprep.mubr.bf16.mxu0 %v1477_v33  ;;  %v303_v42 = vmul.f32 %v1386_v35, %v1638_v10  ;;  %v353_v49 = vadd.f32 %v1709_v28, %v327_v40  ;;  %v781_v35 = vld [vmem:[%s1855_s2] sm:$0x7]  ;;  %s1478_s2 = smov [#allocation7]  }
 0x162   :  { %1399 = vrsqrt.f32 %v270_v38  ;;  %v252_v45 = vmul.f32 0.0078125, %v232_v16  ;;  %v328_v43 = vmul.f32 %v1702_v3, %v302_v60  ;;  %s1103_s9 = sshll.u32 %s1478_s2, 4  ;;  %s1104_s9 = int_to_ptr.vmem [resolvable:$true] %s1103_s9 }
 0x163   :  { %v1388_v46 = vpop.eup %1387  ;;  %1401 = vrsqrt.f32 %v271_v39  ;;  %v368_v47 = vpack.c.bf16 %v352_v41, %v351_v6  ;;  %v329_v7 = vmul.f32 %v1702_v3, %v303_v42  ;;  %s1445_s10 = scalar_lea.vmem %s1104_s9, 3840  ;;  %p1450_p11 = scmp.lt.s32.totalorder %s1104_s9, %s1104_s9 }
 0x164   :  { %v1390_v37 = vpop.eup %1389  ;;  %v272_v48 = vadd.f32 1e-05, %v252_v45  ;;  %v354_v50 = vadd.f32 %v1709_v28, %v328_v43  ;;  %v304_v19 = vmul.f32 %v1388_v46, %v1642_v14  ;;  %p1446_p10 = scmp.ne.s32.totalorder %s1104_s9, %s1445_s10  ;;  %p1451_p12 = scmp.lt.s32.totalorder %s1445_s10, %s1445_s10 }
 0x165   :  { %1310 = vmatmul.mubr.bf16.gmra.mxu1 %v368_v47  ;;  %v305_v10 = vmul.f32 %v1390_v37, %v1650_v15  ;;  %v355_v56 = vadd.f32 %v1709_v28, %v329_v7 }
 0x166   :  { %1403 = vrsqrt.f32 %v272_v48  ;;  %v369_v53 = vpack.c.bf16 %v354_v50, %v353_v49  ;;  %v330_v54 = vmul.f32 %v1702_v3, %v304_v19  ;;  %p1452_p13 = por %p1451_p12, %p1450_p11 }
 0x167   :  { %v1392_v55 = vpop.eup %1391  ;;  %v331_v61 = vmul.f32 %v1702_v3, %v305_v10 }
 0x168   :  { %v1394_v57 = vpop.eup %1393  ;;  %588 = vmatmul.mubr.bf16.gmra.mxu0 %v367_v29  ;;  %1313 = vmatprep.mubr.bf16.mxu1 %v369_v53  ;;  %v356_v58 = vadd.f32 %v1709_v28, %v330_v54  ;;  %v306_v44 = vmul.f32 %v1392_v55, %v1654_v17  ;;  %p1453_p0 = pnand %p1452_p13, %p1446_p10 }
 0x169   :  { %597 = vmatprep.mubr.bf16.mxu0 %v1477_v33  ;;  %v307_v14 = vmul.f32 %v1394_v57, %v1662_v18  ;;  %v357_v0 = vadd.f32 %v1709_v28, %v331_v61 }
 0x16a   :  { %v370_v15 = vpack.c.bf16 %v356_v58, %v355_v56  ;;  %v332_v62 = vmul.f32 %v1702_v3, %v306_v44 }
 0x16b   :  { %v1396_v51 = vpop.eup %1395  ;;  %v333_v22 = vmul.f32 %v1702_v3, %v307_v14 }
 0x16c   :  { %v1398_v63 = vpop.eup %1397  ;;  %v358_v1 = vadd.f32 %v1709_v28, %v332_v62  ;;  %v308_v2 = vmul.f32 %v1396_v51, %v1666_v20 }
 0x16d   :  { %1314 = vmatmul.mubr.bf16.gmra.mxu1 %v370_v15  ;;  %v309_v17 = vmul.f32 %v1398_v63, %v1674_v21  ;;  %v359_v52 = vadd.f32 %v1709_v28, %v333_v22 }
 0x16e   :  { %v371_v4 = vpack.c.bf16 %v358_v1, %v357_v0  ;;  %v334_v5 = vmul.f32 %v1702_v3, %v308_v2 }
 0x16f   :  { %v1400_v18 = vpop.eup %1399  ;;  %v335_v11 = vmul.f32 %v1702_v3, %v309_v17 }
 0x170   :  { %v1402_v8 = vpop.eup %1401  ;;  %598 = vmatmul.mubr.bf16.gmra.mxu0 %v368_v47  ;;  %1317 = vmatprep.mubr.bf16.mxu1 %v371_v4  ;;  %v360_v25 = vadd.f32 %v1709_v28, %v334_v5  ;;  %v310_v9 = vmul.f32 %v1400_v18, %v1678_v23 }
 0x171   :  { %607 = vmatprep.mubr.bf16.mxu0 %v1477_v33  ;;  %v311_v20 = vmul.f32 %v1402_v8, %v1686_v24  ;;  %v361_v59 = vadd.f32 %v1709_v28, %v335_v11 }
 0x172   :  { %v372_v21 = vpack.c.bf16 %v360_v25, %v359_v52  ;;  %v336_v12 = vmul.f32 %v1702_v3, %v310_v9 }
 0x173   :  { %v1404_v30 = vpop.eup %1403  ;;  %v337_v27 = vmul.f32 %v1702_v3, %v311_v20 }
 0x174   :  { %v362_v31 = vadd.f32 %v1709_v28, %v336_v12  ;;  %v312_v13 = vmul.f32 %v1404_v30, %v1690_v26  ;;  %v783_v26 = vlaneseq }
 0x175   :  { %1318 = vmatmul.mubr.bf16.gmra.mxu1 %v372_v21  ;;  %v363_v24 = vadd.f32 %v1709_v28, %v337_v27 }
 0x176   :  { %v373_v23 = vpack.c.bf16 %v362_v31, %v361_v59  ;;  %v338_v36 = vmul.f32 %v1702_v3, %v312_v13  ;;  %v784_v3 = vshrl.u32 %v783_v26, 7 }
 0x178   :  { %608 = vmatmul.mubr.bf16.gmra.mxu0 %v369_v53  ;;  %1321 = vmatprep.mubr.bf16.mxu1 %v373_v23  ;;  %v364_v29 = vadd.f32 %v1709_v28, %v338_v36  ;;  %v785_v28 = vsub.s32 0, %v784_v3  ;;  %v789_v34 = vsub.s32 1, %v784_v3  ;;  %v793_v38 = vsub.s32 2, %v784_v3 }
 0x179   :  { %617 = vmatprep.mubr.bf16.mxu0 %v1477_v33 }
 0x17a   :  { %v374_v32 = vpack.c.bf16 %v364_v29, %v363_v24  ;;  %v1781_v39 = vrot.slane %v781_v35, %v785_v28  ;;  %v1783_v60 = vrot.slane %v781_v35, %v789_v34  ;;  %v1785_v6 = vrot.slane %v781_v35, %v793_v38 }
 0x17d   :  { %1322 = vmatmul.mubr.bf16.gmra.mxu1 %v374_v32 }
 0x180   :  { %618 = vmatmul.mubr.bf16.gmra.mxu0 %v370_v15 }
 0x181   :  { %627 = vmatprep.mubr.bf16.mxu0 %v1477_v33 }
 0x188   :  { %628 = vmatmul.mubr.bf16.gmra.mxu0 %v371_v4 }
 0x189   :  { %637 = vmatprep.mubr.bf16.mxu0 %v1477_v33 }
 0x190   :  { %638 = vmatmul.mubr.bf16.gmra.mxu0 %v372_v21 }
 0x191   :  { %647 = vmatprep.mubr.bf16.mxu0 %v1477_v33 }
 0x198   :  { %648 = vmatmul.mubr.bf16.gmra.mxu0 %v373_v23 }
 0x199   :  { %657 = vmatprep.mubr.bf16.mxu0 %v1477_v33 }
 0x1a0   :  { %658 = vmatmul.mubr.bf16.gmra.mxu0 %v374_v32 }
 0x218   :  { %v569_v40 = vpop.f32.mrf.mxu0 }
 0x219   :  { %v798_v33 = vadd.f32 %v1781_v39, %v569_v40 }
 0x21a   :  { %v571_v16 = vpop.f32.mrf.mxu0 }
 0x21b   :  { %v799_v41 = vadd.f32 %v1783_v60, %v571_v16 }
 0x21c   :  { %v573_v42 = vpop.f32.mrf.mxu0 }
 0x21d   :  { %v1182_v45 = vpack.c.bf16 %v799_v41, %v798_v33  ;;  %v1307_v43 = vpop.f32.mrf.mxu1  ;;  %v801_v7 = vadd.f32 %v1781_v39, %v573_v42 }
 0x21e   :  { %v806_v46 = vadd.f32 %v1307_v43, %v1785_v6  ;;  %v575_v47 = vpop.f32.mrf.mxu0 }
 0x21f   :  { %1058 = vst [vmem:[#allocation7] sm:$0xff] %v1182_v45  ;;  %v802_v37 = vadd.f32 %v1783_v60, %v575_v47  ;;  %v702_v48 = vpop.f32.mrf.mxu1 }
 0x220   :  { %v1187_v49 = vpack.c.bf16 %v806_v46, %v806_v46  ;;  %v800_v50 = vadd.f32 %v1785_v6, %v702_v48  ;;  %v579_v19 = vpop.f32.mrf.mxu0 }
 0x221   :  { %v1184_v10 = vpack.c.bf16 %v802_v37, %v801_v7  ;;  %v1308_v53 = vpop.f32.mrf.mxu1  ;;  %v804_v57 = vadd.f32 %v1781_v39, %v579_v19 }
 0x222   :  { %1063 = vst [vmem:[#allocation7 + $0x20] sm:$0xf] %v1187_v49  ;;  %v1183_v54 = vpack.c.bf16 %v800_v50, %v800_v50  ;;  %v809_v55 = vadd.f32 %v1308_v53, %v1785_v6  ;;  %v581_v56 = vpop.f32.mrf.mxu0 }
 0x223   :  { %1060 = vst [vmem:[#allocation7 + $0xc] sm:$0xff] %v1184_v10  ;;  %v805_v58 = vadd.f32 %v1783_v60, %v581_v56  ;;  %v705_v44 = vpop.f32.mrf.mxu1 }
 0x224   :  { %1059 = vst [vmem:[#allocation7 + $0x8] sm:$0xf] %v1183_v54  ;;  %v1189_v61 = vpack.c.bf16 %v809_v55, %v809_v55  ;;  %v803_v14 = vadd.f32 %v1785_v6, %v705_v44  ;;  %v583_v15 = vpop.f32.mrf.mxu0 }
 0x225   :  { %v1186_v62 = vpack.c.bf16 %v805_v58, %v804_v57  ;;  %v1311_v51 = vpop.f32.mrf.mxu1  ;;  %v807_v1 = vadd.f32 %v1781_v39, %v583_v15 }
 0x226   :  { %1065 = vst [vmem:[#allocation7 + $0x2c] sm:$0xf] %v1189_v61  ;;  %v1185_v22 = vpack.c.bf16 %v803_v14, %v803_v14  ;;  %v818_v63 = vadd.f32 %v1311_v51, %v1785_v6  ;;  %v585_v0 = vpop.f32.mrf.mxu0 }
 0x227   :  { %1062 = vst [vmem:[#allocation7 + $0x18] sm:$0xff] %v1186_v62  ;;  %v808_v2 = vadd.f32 %v1783_v60, %v585_v0  ;;  %v718_v17 = vpop.f32.mrf.mxu1 }
 0x228   :  { %1061 = vst [vmem:[#allocation7 + $0x14] sm:$0xf] %v1185_v22  ;;  %v1195_v4 = vpack.c.bf16 %v818_v63, %v818_v63  ;;  %v812_v5 = vadd.f32 %v1785_v6, %v718_v17  ;;  %v589_v18 = vpop.f32.mrf.mxu0 }
 0x229   :  { %v1188_v52 = vpack.c.bf16 %v808_v2, %v807_v1  ;;  %v1312_v8 = vpop.f32.mrf.mxu1  ;;  %v810_v20 = vadd.f32 %v1781_v39, %v589_v18 }
 0x22a   :  { %1071 = vst [vmem:[#allocation7 + $0x50] sm:$0xf] %v1195_v4  ;;  %v1191_v25 = vpack.c.bf16 %v812_v5, %v812_v5  ;;  %v821_v9 = vadd.f32 %v1312_v8, %v1785_v6  ;;  %v591_v11 = vpop.f32.mrf.mxu0 }
 0x22b   :  { %1064 = vst [vmem:[#allocation7 + $0x24] sm:$0xff] %v1188_v52  ;;  %v811_v21 = vadd.f32 %v1783_v60, %v591_v11  ;;  %v721_v12 = vpop.f32.mrf.mxu1 }
 0x22c   :  { %1067 = vst [vmem:[#allocation7 + $0x38] sm:$0xf] %v1191_v25  ;;  %v1197_v30 = vpack.c.bf16 %v821_v9, %v821_v9  ;;  %v815_v59 = vadd.f32 %v1785_v6, %v721_v12  ;;  %v593_v31 = vpop.f32.mrf.mxu0 }
 0x22d   :  { %v1190_v13 = vpack.c.bf16 %v811_v21, %v810_v20  ;;  %v1315_v27 = vpop.f32.mrf.mxu1  ;;  %v813_v29 = vadd.f32 %v1781_v39, %v593_v31 }
 0x22e   :  { %1073 = vst [vmem:[#allocation7 + $0x5c] sm:$0xf] %v1197_v30  ;;  %v1193_v23 = vpack.c.bf16 %v815_v59, %v815_v59  ;;  %v830_v36 = vadd.f32 %v1315_v27, %v1785_v6  ;;  %v595_v24 = vpop.f32.mrf.mxu0 }
 0x22f   :  { %1066 = vst [vmem:[#allocation7 + $0x30] sm:$0xff] %v1190_v13  ;;  %v814_v32 = vadd.f32 %v1783_v60, %v595_v24  ;;  %v734_v26 = vpop.f32.mrf.mxu1 }
 0x230   :  { %1069 = vst [vmem:[#allocation7 + $0x44] sm:$0xf] %v1193_v23  ;;  %v1203_v3 = vpack.c.bf16 %v830_v36, %v830_v36  ;;  %v824_v28 = vadd.f32 %v1785_v6, %v734_v26  ;;  %v599_v34 = vpop.f32.mrf.mxu0 }
 0x231   :  { %v1192_v35 = vpack.c.bf16 %v814_v32, %v813_v29  ;;  %v1316_v38 = vpop.f32.mrf.mxu1  ;;  %v816_v41 = vadd.f32 %v1781_v39, %v599_v34 }
 0x232   :  { %1079 = vst [vmem:[#allocation7 + $0x80] sm:$0xf] %v1203_v3  ;;  %v1199_v40 = vpack.c.bf16 %v824_v28, %v824_v28  ;;  %v833_v16 = vadd.f32 %v1316_v38, %v1785_v6  ;;  %v601_v33 = vpop.f32.mrf.mxu0 }
 0x233   :  { %1068 = vst [vmem:[#allocation7 + $0x3c] sm:$0xff] %v1192_v35  ;;  %v817_v42 = vadd.f32 %v1783_v60, %v601_v33  ;;  %v737_v45 = vpop.f32.mrf.mxu1 }
 0x234   :  { %1075 = vst [vmem:[#allocation7 + $0x68] sm:$0xf] %v1199_v40  ;;  %v1205_v43 = vpack.c.bf16 %v833_v16, %v833_v16  ;;  %v827_v46 = vadd.f32 %v1785_v6, %v737_v45  ;;  %v603_v47 = vpop.f32.mrf.mxu0 }
 0x235   :  { %v1194_v7 = vpack.c.bf16 %v817_v42, %v816_v41  ;;  %v1319_v37 = vpop.f32.mrf.mxu1  ;;  %v819_v19 = vadd.f32 %v1781_v39, %v603_v47 }
 0x236   :  { %1081 = vst [vmem:[#allocation7 + $0x8c] sm:$0xf] %v1205_v43  ;;  %v1201_v48 = vpack.c.bf16 %v827_v46, %v827_v46  ;;  %v842_v49 = vadd.f32 %v1319_v37, %v1785_v6  ;;  %v605_v50 = vpop.f32.mrf.mxu0 }
 0x237   :  { %1070 = vst [vmem:[#allocation7 + $0x48] sm:$0xff] %v1194_v7  ;;  %v820_v10 = vadd.f32 %v1783_v60, %v605_v50  ;;  %v750_v53 = vpop.f32.mrf.mxu1 }
 0x238   :  { %1077 = vst [vmem:[#allocation7 + $0x74] sm:$0xf] %v1201_v48  ;;  %v1211_v54 = vpack.c.bf16 %v842_v49, %v842_v49  ;;  %v836_v55 = vadd.f32 %v1785_v6, %v750_v53  ;;  %v609_v56 = vpop.f32.mrf.mxu0 }
 0x239   :  { %v1196_v57 = vpack.c.bf16 %v820_v10, %v819_v19  ;;  %v1320_v58 = vpop.f32.mrf.mxu1  ;;  %v822_v15 = vadd.f32 %v1781_v39, %v609_v56 }
 0x23a   :  { %1087 = vst [vmem:[#allocation7 + $0xb0] sm:$0xf] %v1211_v54  ;;  %v1207_v44 = vpack.c.bf16 %v836_v55, %v836_v55  ;;  %v845_v61 = vadd.f32 %v1320_v58, %v1785_v6  ;;  %v611_v14 = vpop.f32.mrf.mxu0 }
 0x23b   :  { %1072 = vst [vmem:[#allocation7 + $0x54] sm:$0xff] %v1196_v57  ;;  %v823_v62 = vadd.f32 %v1783_v60, %v611_v14  ;;  %v753_v51 = vpop.f32.mrf.mxu1 }
 0x23c   :  { %1083 = vst [vmem:[#allocation7 + $0x98] sm:$0xf] %v1207_v44  ;;  %v1213_v22 = vpack.c.bf16 %v845_v61, %v845_v61  ;;  %v839_v63 = vadd.f32 %v1785_v6, %v753_v51  ;;  %v613_v0 = vpop.f32.mrf.mxu0 }
 0x23d   :  { %v1198_v1 = vpack.c.bf16 %v823_v62, %v822_v15  ;;  %v1323_v2 = vpop.f32.mrf.mxu1  ;;  %v825_v18 = vadd.f32 %v1781_v39, %v613_v0 }
 0x23e   :  { %1089 = vst [vmem:[#allocation7 + $0xbc] sm:$0xf] %v1213_v22  ;;  %v1209_v17 = vpack.c.bf16 %v839_v63, %v839_v63  ;;  %v854_v4 = vadd.f32 %v1323_v2, %v1785_v6  ;;  %v615_v5 = vpop.f32.mrf.mxu0 }
 0x23f   :  { %1074 = vst [vmem:[#allocation7 + $0x60] sm:$0xff] %v1198_v1  ;;  %v826_v52 = vadd.f32 %v1783_v60, %v615_v5  ;;  %v766_v8 = vpop.f32.mrf.mxu1 }
 0x240   :  { %1085 = vst [vmem:[#allocation7 + $0xa4] sm:$0xf] %v1209_v17  ;;  %v1219_v25 = vpack.c.bf16 %v854_v4, %v854_v4  ;;  %v848_v9 = vadd.f32 %v1785_v6, %v766_v8  ;;  %v619_v11 = vpop.f32.mrf.mxu0 }
 0x241   :  { %v1200_v20 = vpack.c.bf16 %v826_v52, %v825_v18  ;;  %v1324_v21 = vpop.f32.mrf.mxu1  ;;  %v828_v31 = vadd.f32 %v1781_v39, %v619_v11 }
 0x242   :  { %1095 = vst [vmem:[#allocation7 + $0xe0] sm:$0xf] %v1219_v25  ;;  %v1215_v12 = vpack.c.bf16 %v848_v9, %v848_v9  ;;  %v857_v30 = vadd.f32 %v1324_v21, %v1785_v6  ;;  %v621_v59 = vpop.f32.mrf.mxu0 }
 0x243   :  { %1076 = vst [vmem:[#allocation7 + $0x6c] sm:$0xff] %v1200_v20  ;;  %v829_v13 = vadd.f32 %v1783_v60, %v621_v59  ;;  %v769_v27 = vpop.f32.mrf.mxu1 }
 0x244   :  { %1091 = vst [vmem:[#allocation7 + $0xc8] sm:$0xf] %v1215_v12  ;;  %v1221_v23 = vpack.c.bf16 %v857_v30, %v857_v30  ;;  %v851_v36 = vadd.f32 %v1785_v6, %v769_v27  ;;  %v623_v24 = vpop.f32.mrf.mxu0 }
 0x245   :  { %v1202_v29 = vpack.c.bf16 %v829_v13, %v828_v31  ;;  %v831_v3 = vadd.f32 %v1781_v39, %v623_v24 }
 0x246   :  { %1097 = vst [vmem:[#allocation7 + $0xec] sm:$0xf] %v1221_v23  ;;  %v1217_v32 = vpack.c.bf16 %v851_v36, %v851_v36  ;;  %v625_v26 = vpop.f32.mrf.mxu0 }
 0x247   :  { %1078 = vst [vmem:[#allocation7 + $0x78] sm:$0xff] %v1202_v29  ;;  %v832_v28 = vadd.f32 %v1783_v60, %v625_v26 }
 0x248   :  { %1093 = vst [vmem:[#allocation7 + $0xd4] sm:$0xf] %v1217_v32  ;;  %v629_v34 = vpop.f32.mrf.mxu0 }
 0x249   :  { %v1204_v35 = vpack.c.bf16 %v832_v28, %v831_v3  ;;  %v834_v40 = vadd.f32 %v1781_v39, %v629_v34 }
 0x24a   :  { %v631_v38 = vpop.f32.mrf.mxu0 }
 0x24b   :  { %1080 = vst [vmem:[#allocation7 + $0x84] sm:$0xff] %v1204_v35  ;;  %v835_v16 = vadd.f32 %v1783_v60, %v631_v38 }
 0x24c   :  { %v633_v6 = vpop.f32.mrf.mxu0 }
 0x24d   :  { %v1206_v33 = vpack.c.bf16 %v835_v16, %v834_v40  ;;  %v837_v42 = vadd.f32 %v1781_v39, %v633_v6 }
 0x24e   :  { %v635_v41 = vpop.f32.mrf.mxu0 }
 0x24f   :  { %1082 = vst [vmem:[#allocation7 + $0x90] sm:$0xff] %v1206_v33  ;;  %v838_v45 = vadd.f32 %v1783_v60, %v635_v41 }
 0x250   :  { %v639_v43 = vpop.f32.mrf.mxu0 }
 0x251   :  { %v1208_v46 = vpack.c.bf16 %v838_v45, %v837_v42  ;;  %v840_v7 = vadd.f32 %v1781_v39, %v639_v43 }
 0x252   :  { %v641_v47 = vpop.f32.mrf.mxu0 }
 0x253   :  { %1084 = vst [vmem:[#allocation7 + $0x9c] sm:$0xff] %v1208_v46  ;;  %v841_v37 = vadd.f32 %v1783_v60, %v641_v47 }
 0x254   :  { %v643_v48 = vpop.f32.mrf.mxu0 }
 0x255   :  { %v1210_v49 = vpack.c.bf16 %v841_v37, %v840_v7  ;;  %v843_v19 = vadd.f32 %v1781_v39, %v643_v48 }
 0x256   :  { %v645_v50 = vpop.f32.mrf.mxu0 }
 0x257   :  { %1086 = vst [vmem:[#allocation7 + $0xa8] sm:$0xff] %v1210_v49  ;;  %v844_v10 = vadd.f32 %v1783_v60, %v645_v50 }
 0x258   :  { %v649_v53 = vpop.f32.mrf.mxu0 }
 0x259   :  { %v1212_v54 = vpack.c.bf16 %v844_v10, %v843_v19  ;;  %v846_v56 = vadd.f32 %v1781_v39, %v649_v53 }
 0x25a   :  { %v651_v55 = vpop.f32.mrf.mxu0 }
 0x25b   :  { %1088 = vst [vmem:[#allocation7 + $0xb4] sm:$0xff] %v1212_v54  ;;  %v847_v57 = vadd.f32 %v1783_v60, %v651_v55 }
 0x25c   :  { %v653_v58 = vpop.f32.mrf.mxu0 }
 0x25d   :  { %v1214_v44 = vpack.c.bf16 %v847_v57, %v846_v56  ;;  %v849_v14 = vadd.f32 %v1781_v39, %v653_v58 }
 0x25e   :  { %v655_v61 = vpop.f32.mrf.mxu0 }
 0x25f   :  { %1090 = vst [vmem:[#allocation7 + $0xc0] sm:$0xff] %v1214_v44  ;;  %v850_v15 = vadd.f32 %v1783_v60, %v655_v61 }
 0x260   :  { %v659_v62 = vpop.f32.mrf.mxu0 }
 0x261   :  { %v1216_v51 = vpack.c.bf16 %v850_v15, %v849_v14  ;;  %v852_v63 = vadd.f32 %v1781_v39, %v659_v62 }
 0x262   :  { %v661_v22 = vpop.f32.mrf.mxu0 }
 0x263   :  { %1092 = vst [vmem:[#allocation7 + $0xcc] sm:$0xff] %v1216_v51  ;;  %v853_v0 = vadd.f32 %v1783_v60, %v661_v22 }
 0x264   :  { %v663_v1 = vpop.f32.mrf.mxu0 }
 0x265   :  { %v1218_v2 = vpack.c.bf16 %v853_v0, %v852_v63  ;;  %v855_v4 = vadd.f32 %v1781_v39, %v663_v1 }
 0x266   :  { %v665_v17 = vpop.f32.mrf.mxu0 }
 0x267   :  { %1094 = vst [vmem:[#allocation7 + $0xd8] sm:$0xff] %v1218_v2  ;;  %v856_v5 = vadd.f32 %v1783_v60, %v665_v17 }
 0x269   :  { %v1220_v18 = vpack.c.bf16 %v856_v5, %v855_v4 }
 0x26b   :  { %1096 = vst [vmem:[#allocation7 + $0xe4] sm:$0xff] %v1220_v18 }
 0x26c   :  { %1456 = shalt.err (!%p1453_p0)
}
 0x26d   :  { %1109 = dma.vmem_to_hbm [thread:$0]  %s1104_s9, 3840, %s1858_s5, [#allocation4], %s1475_s28, %s1475_s28, %s1476_s29  }
 0x26e   :  { %1469 = dma.done.wait [#allocation4], 3840  }
 0x26f   :  { %1470 = vsyncadd [#allocation4], 4294963456 }
 0x270   :  { %1113 = vsyncpa [#allocation3], 1 }
 0x271   :  { %1114 = vsyncpa [#allocation6], 1 }
 0x272   :  { %1115 = vsyncpa [#allocation4], 1 }

</bundles_post_ra>
